<compile_context>
chip_gen: v7x
topology: tpu7x:2x2x1
jax: 0.10.0
libtpu: 0.0.40
codegen_flags: <defaults>
</compile_context>

<pallas_src>
import jax
import jax.numpy as jnp
from jax.experimental import pallas as pl
from jax.experimental.pallas import tpu as pltpu


def _round_up(x: int, m: int) -> int:
    return ((x + m - 1) // m) * m


# ----------------------------------------------------------------------------
# Pallas kernel: out = concat(body, hand, axis=-1) * std + mean
# ----------------------------------------------------------------------------
def _denorm_kernel(body_ref, hand_ref, std_ref, mean_ref, out_ref):
    # body_ref: (TM, Db)   hand_ref: (TM, Dh)
    # std_ref / mean_ref: (1, D) f32, resident in VMEM (constant index_map)
    # out_ref: (TM, D) — full-dim lane block (unmasked vst when D % 128 == 0,
    # masked tail lanes otherwise, which still beats an extra HBM pass).
    x = jnp.concatenate([body_ref[...], hand_ref[...]], axis=-1)
    y = x.astype(jnp.float32) * std_ref[...] + mean_ref[...]
    out_ref[...] = y.astype(out_ref.dtype)


def motion_denorm(body_repre, hand_repre, motion_std, motion_mean, *,
                  tm=4096, out_dtype=None):
    """Fused concat + affine de-normalization (decode_motion hot path).

    body_repre: (B, T, Db)
    hand_repre: (B, T, Dh)
    motion_std, motion_mean: (Db+Dh,)
    returns: (B, T, Db+Dh) in `out_dtype` (default: body_repre.dtype)
    """
    B, T, Db = body_repre.shape
    Dh = hand_repre.shape[-1]
    D = Db + Dh
    N = B * T
    if out_dtype is None:
        out_dtype = body_repre.dtype

    body2d = body_repre.reshape(N, Db)
    hand2d = hand_repre.reshape(N, Dh)
    std2d = motion_std.astype(jnp.float32).reshape(1, D)
    mean2d = motion_mean.astype(jnp.float32).reshape(1, D)

    # --- row tiling --------------------------------------------------------
    if N <= tm:
        # Single grid step; block row dim == full array dim is always legal,
        # even for ragged N (e.g. N=21).
        tm_eff, steps = N, 1
    else:
        tm_eff = max(8, (tm // 8) * 8)          # sublane-aligned tile
        steps = pl.cdiv(N, tm_eff)              # masked partial tail block
        # v7x: make the step count even so ("parallel",) balances both TCs.
        if steps > 1 and steps % 2 == 1:
            cand_steps = steps + 1
            cand_tm = _round_up(pl.cdiv(N, cand_steps), 8)
            if (cand_steps - 1) * cand_tm < N:  # last block must start in-bounds
                steps, tm_eff = cand_steps, cand_tm

    out = pl.pallas_call(
        _denorm_kernel,
        out_shape=jax.ShapeDtypeStruct((N, D), out_dtype),
        grid=(steps,),
        in_specs=[
            pl.BlockSpec((tm_eff, Db), lambda i: (i, 0)),
            pl.BlockSpec((tm_eff, Dh), lambda i: (i, 0)),
            # constant index_map -> std/mean stay resident in VMEM, no re-DMA
            pl.BlockSpec((1, D), lambda i: (0, 0)),
            pl.BlockSpec((1, D), lambda i: (0, 0)),
        ],
        out_specs=pl.BlockSpec((tm_eff, D), lambda i: (i, 0)),
        compiler_params=pltpu.CompilerParams(
            dimension_semantics=("parallel",),
        ),
    )(body2d, hand2d, std2d, mean2d)

    return out.reshape(B, T, D)


# ----------------------------------------------------------------------------
# ECModel (JAX): deterministic synthetic parameters, forward semantics.
# ----------------------------------------------------------------------------
class ECModel:
    def __init__(self, d_body=64, d_hand=64, seed=0):
        self.d_body = d_body
        self.d_hand = d_hand
        D = d_body + d_hand
        k = jax.random.PRNGKey(seed)
        k_mean, k_std = jax.random.split(k)
        # Stand-ins for motion_mean / motion_std loaded from the .npz in torch.
        self.motion_mean = jax.random.normal(k_mean, (D,), dtype=jnp.float32)
        std = jnp.abs(jax.random.normal(k_std, (D,), dtype=jnp.float32))
        # torch: motion_std = np.where(motion_std == 0, 1e-9, motion_std)
        self.motion_std = jnp.where(std == 0, 1e-9, std)

    def decode_motion_denorm(self, body_repre, hand_repre, **kw):
        """The tensor core of ECModel.decode_motion (post-VQVAE decode)."""
        return motion_denorm(body_repre, hand_repre,
                             self.motion_std, self.motion_mean, **kw)

    def forward(self, prompts):
        # TODO(synk): torch ECModel.forward is `pass` (returns None); the full
        # pipeline (speech tokenizer, LLM generate, VQVAE decode, SMPL-X FK)
        # has no self-contained Pallas equivalent.
        return None


def _reference(body, hand, std, mean):
    return jnp.concatenate([body, hand], axis=-1) * std + mean


if __name__ == "__main__":
    # --- primary demo: shapes consistent with the module, D = 128 ----------
    B, T = 2, 8
    Db, Dh = 64, 64

    model = ECModel(d_body=Db, d_hand=Dh, seed=0)

    key = jax.random.PRNGKey(0)
    kb, kh = jax.random.split(key)
    body_repre = jax.random.normal(kb, (B, T, Db), dtype=jnp.float32)
    hand_repre = jax.random.normal(kh, (B, T, Dh), dtype=jnp.float32)

    out = model.decode_motion_denorm(body_repre, hand_repre)
    out = jax.block_until_ready(out)

    ref = _reference(body_repre, hand_repre, model.motion_std, model.motion_mean)
    assert out.shape == (B, T, Db + Dh)
    assert jnp.allclose(out, ref, atol=1e-5, rtol=1e-5)

    # --- ragged path: odd row count, non-128 feature dim (single block) ----
    B2, T2, Db2, Dh2 = 3, 7, 60, 53      # N=21, D=113 (masked tail lanes)
    model2 = ECModel(d_body=Db2, d_hand=Dh2, seed=1)
    kb2, kh2 = jax.random.split(jax.random.PRNGKey(0), 2)
    body2 = jax.random.normal(kb2, (B2, T2, Db2), dtype=jnp.float32)
    hand2 = jax.random.normal(kh2, (B2, T2, Dh2), dtype=jnp.float32)

    out2 = jax.block_until_ready(model2.decode_motion_denorm(body2, hand2))
    ref2 = _reference(body2, hand2, model2.motion_std, model2.motion_mean)
    assert out2.shape == (B2, T2, Db2 + Dh2)
    assert jnp.allclose(out2, ref2, atol=1e-5, rtol=1e-5)

    # --- multi-step grid path: partial tail block + odd->even step rebalance
    B3, T3 = 4, 175                       # N=700; tm=256 -> 3 steps -> 4 steps
    kb3, kh3 = jax.random.split(jax.random.PRNGKey(1), 2)
    body3 = jax.random.normal(kb3, (B3, T3, Db), dtype=jnp.float32)
    hand3 = jax.random.normal(kh3, (B3, T3, Dh), dtype=jnp.float32)

    out3 = jax.block_until_ready(
        model.decode_motion_denorm(body3, hand3, tm=256))
    ref3 = _reference(body3, hand3, model.motion_std, model.motion_mean)
    assert out3.shape == (B3, T3, Db + Dh)
    assert jnp.allclose(out3, ref3, atol=1e-5, rtol=1e-5)

    print("KERNEL_OK")
</pallas_src>

<mosaic_0001>
module attributes {stable_mosaic.version = 11 : i64} {
  func.func @_denorm_kernel(%arg0: i32, %arg1: memref<16x64xf32, #tpu.memory_space<vmem>>, %arg2: memref<16x64xf32, #tpu.memory_space<vmem>>, %arg3: memref<1x128xf32, #tpu.memory_space<vmem>>, %arg4: memref<1x128xf32, #tpu.memory_space<vmem>>, %arg5: memref<16x128xf32, #tpu.memory_space<vmem>>) attributes {dimension_semantics = [#tpu.dimension_semantics<parallel>], iteration_bounds = array<i64: 1>, scalar_prefetch = 0 : i64, scratch_operands = 0 : i64, tpu.core_type = #tpu.core_type<tc>, window_params = [{transform_indices = @transform_0, window_bounds = array<i64: 16, 64>}, {transform_indices = @transform_1, window_bounds = array<i64: 16, 64>}, {pipeline_mode = #tpu.pipeline_mode<synchronous>, transform_indices = @transform_2, window_bounds = array<i64: 1, 128>}, {pipeline_mode = #tpu.pipeline_mode<synchronous>, transform_indices = @transform_3, window_bounds = array<i64: 1, 128>}, {transform_indices = @transform_4, window_bounds = array<i64: 16, 128>}]} {
    %c0 = arith.constant 0 : index
    %c0_0 = arith.constant 0 : index
    %0 = vector.load %arg1[%c0, %c0_0] : memref<16x64xf32, #tpu.memory_space<vmem>>, vector<16x64xf32>
    %c0_1 = arith.constant 0 : index
    %c0_2 = arith.constant 0 : index
    %1 = vector.load %arg2[%c0_1, %c0_2] : memref<16x64xf32, #tpu.memory_space<vmem>>, vector<16x64xf32>
    %2 = tpu.concatenate %0, %1 in 1 : vector<16x64xf32>, vector<16x64xf32> -> vector<16x128xf32>
    %c0_3 = arith.constant 0 : index
    %c0_4 = arith.constant 0 : index
    %3 = vector.load %arg3[%c0_3, %c0_4] : memref<1x128xf32, #tpu.memory_space<vmem>>, vector<1x128xf32>
    %4 = vector.broadcast %3 : vector<1x128xf32> to vector<16x128xf32>
    %5 = arith.mulf %2, %4 : vector<16x128xf32>
    %c0_5 = arith.constant 0 : index
    %c0_6 = arith.constant 0 : index
    %6 = vector.load %arg4[%c0_5, %c0_6] : memref<1x128xf32, #tpu.memory_space<vmem>>, vector<1x128xf32>
    %7 = vector.broadcast %6 : vector<1x128xf32> to vector<16x128xf32>
    %8 = arith.addf %5, %7 : vector<16x128xf32>
    %c0_7 = arith.constant 0 : index
    %c0_8 = arith.constant 0 : index
    %9 = vector.load %arg5[%c0_7, %c0_8] : memref<16x128xf32, #tpu.memory_space<vmem>>, vector<16x128xf32>
    tpu.vector_store %arg5[%c0_7, %c0_8], %8 {strides = array<i32>} : memref<16x128xf32, #tpu.memory_space<vmem>>, vector<16x128xf32>,
    return
  }
  func.func @transform_0(%arg0: i32) -> (i32, i32) {
    %c0_i32 = arith.constant 0 : i32
    %c0_i32_0 = arith.constant 0 : i32
    return %arg0, %c0_i32 : i32, i32
  }
  func.func @transform_1(%arg0: i32) -> (i32, i32) {
    %c0_i32 = arith.constant 0 : i32
    %c0_i32_0 = arith.constant 0 : i32
    return %arg0, %c0_i32 : i32, i32
  }
  func.func @transform_2(%arg0: i32) -> (i32, i32) {
    %c0_i32 = arith.constant 0 : i32
    %c0_i32_0 = arith.constant 0 : i32
    %c0_i32_1 = arith.constant 0 : i32
    return %c0_i32, %c0_i32_0 : i32, i32
  }
  func.func @transform_3(%arg0: i32) -> (i32, i32) {
    %c0_i32 = arith.constant 0 : i32
    %c0_i32_0 = arith.constant 0 : i32
    %c0_i32_1 = arith.constant 0 : i32
    return %c0_i32, %c0_i32_0 : i32, i32
  }
  func.func @transform_4(%arg0: i32) -> (i32, i32) {
    %c0_i32 = arith.constant 0 : i32
    %c0_i32_0 = arith.constant 0 : i32
    return %arg0, %c0_i32 : i32, i32
  }
}

</mosaic_0001>

<bundles_post_ra>
// kernel: tpu_custom_call.1
= control target key start
LH: loop header
LB: loop body
LE: loop exit
PB: predicated region body
PF: predicated region fallthrough
CT: control target
= control target key end

     0   :  { %9 = vsyncpa [#allocation3], 0  ;;  %s261_s0 = inlined_call_operand.hbm [shape: f32[16,64], index: 0, kind: input, shape index: {}]   ;;  %s262_s1 = inlined_call_operand.hbm [shape: f32[16,64], index: 1, kind: input, shape index: {}]   ;;  %s263_s2 = inlined_call_operand.vmem [shape: f32[1,128], index: 2, kind: input, shape index: {}]   ;;  %s264_s3 = inlined_call_operand.vmem [shape: f32[1,128], index: 3, kind: input, shape index: {}]   ;;  %s265_s4 = inlined_call_operand.hbm [shape: f32[16,128], index: 4, kind: output, shape index: {}]  }
   0x1   :  { %10 = vsyncpa [#allocation6], 0 }
   0x2   :  { %11 = vsyncpa [#allocation4], 0  ;;  %s179_s15 = smov [#allocation2]   ;;  %s107_s19 = scalar_lea.hbm %s261_s0, 256 }
   0x3   :  { %s17_s16 = sshll.u32 %s179_s15, 4  ;;  %p108_p0 = scmp.ne.s32.totalorder %s261_s0, %s107_s19  ;;  %s18_s16 = int_to_ptr.vmem [resolvable:$true] %s17_s16 }
   0x4   :  { %p111_p1 = scmp.lt.u32.totalorder %s107_s19, %s261_s0 }
   0x6   :  { %p113_p2 = pnand %p111_p1, %p108_p0 }
   0x8   :  { %116 = shalt.err (!%p113_p2)
}
   0x9   :  { %s117_s24 = scalar_lea.vmem %s18_s16, 256  ;;  %p122_p4 = scmp.lt.s32.totalorder %s18_s16, %s18_s16 }
   0xa   :  { %p118_p3 = scmp.ne.s32.totalorder %s18_s16, %s117_s24  ;;  %p123_p5 = scmp.lt.s32.totalorder %s117_s24, %s117_s24 }
   0xc   :  { %p124_p6 = por %p123_p5, %p122_p4 }
   0xe   :  { %p125_p7 = pnand %p124_p6, %p118_p3 }
  0x10   :  { %128 = shalt.err (!%p125_p7)
}
  0x11   :  { %s180_s25 = smov 128   ;;  %s181_s26 = smov 8  }
  0x12   :  { %23 = dma.hbm_to_vmem [thread:$0]  %s261_s0, 256, %s18_s16, [#allocation3], %s180_s25, %s180_s25, %s181_s26  }
  0x13   :  { %s182_s29 = smov [#allocation5]   ;;  %s129_s7 = scalar_lea.hbm %s262_s1, 256 }
  0x14   :  { %s29_s30 = sshll.u32 %s182_s29, 4  ;;  %p130_p8 = scmp.ne.s32.totalorder %s262_s1, %s129_s7  ;;  %s30_s30 = int_to_ptr.vmem [resolvable:$true] %s29_s30 }
  0x15   :  { %p133_p9 = scmp.lt.u32.totalorder %s129_s7, %s262_s1 }
  0x17   :  { %p135_p10 = pnand %p133_p9, %p130_p8 }
  0x19   :  { %138 = shalt.err (!%p135_p10)
}
  0x1a   :  { %s139_s12 = scalar_lea.vmem %s30_s30, 256  ;;  %p144_p12 = scmp.lt.s32.totalorder %s30_s30, %s30_s30 }
  0x1b   :  { %p140_p11 = scmp.ne.s32.totalorder %s30_s30, %s139_s12  ;;  %p145_p13 = scmp.lt.s32.totalorder %s139_s12, %s139_s12 }
  0x1d   :  { %p146_p0 = por %p145_p13, %p144_p12 }
  0x1f   :  { %p147_p1 = pnand %p146_p0, %p140_p11 }
  0x21   :  { %150 = shalt.err (!%p147_p1)
}
  0x22   :  { %35 = dma.hbm_to_vmem [thread:$0]  %s262_s1, 256, %s30_s30, [#allocation6], %s180_s25, %s180_s25, %s181_s26  }
  0x23   :  { %173 = dma.done.wait [#allocation3], 256  }
  0x24   :  { %174 = vsyncadd [#allocation3], 4294967040 }
  0x25   :  { %175 = dma.done.wait [#allocation6], 256  }
  0x26   :  { %176 = vsyncadd [#allocation6], 4294967040  ;;  %v48_v0 = vld [vmem:[#allocation5] sm:$0xff]  ;;  %s183_s14 = smov 64   ;;  %v49_v1 = vld [vmem:[#allocation5 + $0x8] sm:$0xff]  ;;  %vm58_vm0 = vcmask 523264  }
  0x27   :  { %52 = vrot.lane.b32.xlu0 %v48_v0, %s183_s14  ;;  %v46_v2 = vld [vmem:[#allocation2] sm:$0xff]  ;;  %v47_v8 = vld [vmem:[#allocation2 + $0x8] sm:$0xff]  ;;  %s184_s1 = smov [#allocation7]  }
  0x28   :  { %v99_v3 = vld [vmem:[%s263_s2] ss:$0 sm:$0xff]  ;;  %s86_s19 = sshll.u32 %s184_s1, 4  ;;  %s87_s19 = int_to_ptr.vmem [resolvable:$true] %s86_s19 }
  0x29   :  { %v100_v5 = vld [vmem:[%s264_s3] ss:$0 sm:$0xff]  ;;  %s151_s20 = scalar_lea.vmem %s87_s19, 256  ;;  %p156_p3 = scmp.lt.s32.totalorder %s87_s19, %s87_s19 }
  0x2a   :  { %p152_p2 = scmp.ne.s32.totalorder %s87_s19, %s151_s20  ;;  %p157_p4 = scmp.lt.s32.totalorder %s151_s20, %s151_s20 }
  0x2b   :  { %54 = vrot.lane.b32.xlu0 %v49_v1, %s183_s14 }
  0x2c   :  { %p158_p5 = por %p157_p4, %p156_p3 }
  0x2e   :  { %p159_p6 = pnand %p158_p5, %p152_p2 }
  0x99   :  { %v53_v4 = vpop.permute.xlu0 %52 }
  0x9a   :  { %v59_v6 = vsel %vm58_vm0, %v46_v2, %v53_v4 }
  0x9b   :  { %v68_v7 = vmul.f32 %v99_v3, %v59_v6 }
  0x9d   :  { %v77_v9 = vadd.f32 %v100_v5, %v68_v7  ;;  %v55_v10 = vpop.permute.xlu0 %54 }
  0x9e   :  { %v60_v11 = vsel %vm58_vm0, %v47_v8, %v55_v10 }
  0x9f   :  { %79 = vst [vmem:[#allocation7] sm:$0xff] %v77_v9  ;;  %v69_v12 = vmul.f32 %v99_v3, %v60_v11 }
  0xa1   :  { %v78_v13 = vadd.f32 %v100_v5, %v69_v12 }
  0xa3   :  { %80 = vst [vmem:[#allocation7 + $0x8] sm:$0xff] %v78_v13 }
  0xa4   :  { %162 = shalt.err (!%p159_p6)
}
  0xa5   :  { %s163_s21 = scalar_lea.hbm %s265_s4, 256 }
  0xa6   :  { %p164_p7 = scmp.ne.s32.totalorder %s265_s4, %s163_s21  ;;  %p167_p8 = scmp.lt.u32.totalorder %s163_s21, %s265_s4 }
  0xa8   :  { %p169_p9 = pnand %p167_p8, %p164_p7 }
  0xaa   :  { %172 = shalt.err (!%p169_p9)
}
  0xab   :  { %92 = dma.vmem_to_hbm [thread:$0]  %s87_s19, 256, %s265_s4, [#allocation4], %s180_s25, %s180_s25, %s181_s26  }
  0xac   :  { %177 = dma.done.wait [#allocation4], 256  }
  0xad   :  { %178 = vsyncadd [#allocation4], 4294967040 }
  0xae   :  { %96 = vsyncpa [#allocation3], 1 }
  0xaf   :  { %97 = vsyncpa [#allocation6], 1 }
  0xb0   :  { %98 = vsyncpa [#allocation4], 1 }

</bundles_post_ra>
